<compile_context>
chip_gen: v7x
topology: tpu7x:2x2x1
jax: 0.10.0
libtpu: 0.0.40
codegen_flags: <defaults>
</compile_context>

<pallas_src>
import functools
import math

import jax
import jax.numpy as jnp
from jax.experimental import pallas as pl
from jax.experimental.pallas import tpu as pltpu

EPS = 1e-5   # InstanceNorm1d default eps
K = 3        # kernel_size (padding = 1, stride = 1)


def resblock_kernel(compute_dtype,
                    x_ref, w1_ref, b1_ref, w2_ref, b2_ref,
                    seg_ref, first_ref, last_ref, alpha_ref, o_ref):
    # x_ref / o_ref : (C, T) with T = b_tile * L   (batch folded onto lanes)
    # w*_ref        : (3, C, C)  taps [l-1, l, l+1]
    # b*_ref        : (C, 1)
    # seg_ref       : (T, b_tile) 0/1 f32 segment matrix (per-sample reduce)
    # first/last_ref: (1, T) 0/1 f32 masks for l==0 / l==L-1 within each sample
    # alpha_ref     : (1, 1) shared PReLU weight in SMEM
    C, T = x_ref.shape
    B = seg_ref.shape[1]
    inv_L = 1.0 / (T // B)
    alpha = alpha_ref[0, 0]

    x = x_ref[...].astype(jnp.float32)          # residual kept in f32
    seg = seg_ref[...]                          # (T, B)
    m_first = first_ref[...]                    # (1, T)
    m_last = last_ref[...]                      # (1, T)

    def neighbours(y):
        # prev[:, t] = y[:, t-1], nxt[:, t] = y[:, t+1] (circular over fused axis);
        # reflection + sample-boundary fix via arithmetic select with the masks.
        prev = jnp.concatenate([y[:, T - 1:], y[:, :T - 1]], axis=1)
        nxt = jnp.concatenate([y[:, 1:], y[:, :1]], axis=1)
        left = prev + m_first * (nxt - prev)     # at l==0   -> y[:, 1]
        right = nxt + m_last * (prev - nxt)      # at l==L-1 -> y[:, L-2]
        return left, right

    def conv(y, w_ref, bias):
        left, right = neighbours(y)
        w = w_ref[...].astype(compute_dtype)     # (3, C, C)
        cd = compute_dtype
        h = jnp.dot(w[0], left.astype(cd), preferred_element_type=jnp.float32)
        h = h + jnp.dot(w[1], y.astype(cd), preferred_element_type=jnp.float32)
        h = h + jnp.dot(w[2], right.astype(cd), preferred_element_type=jnp.float32)
        return h + bias                          # (C, T) f32

    def inorm(h):
        # per-(channel, sample) mean/var over L via MXU segment matmuls (f32)
        s1 = jnp.dot(h, seg, preferred_element_type=jnp.float32)        # (C, B)
        s2 = jnp.dot(h * h, seg, preferred_element_type=jnp.float32)    # (C, B)
        m = s1 * inv_L
        v = jnp.maximum(s2 * inv_L - m * m, 0.0)
        r = jax.lax.rsqrt(v + EPS)                                       # (C, B)
        # broadcast scale / shift back to (C, T):  (y - m) * r = y*r - m*r
        scale = jax.lax.dot_general(r, seg, (((1,), (1,)), ((), ())),
                                    preferred_element_type=jnp.float32)
        shift = jax.lax.dot_general(m * r, seg, (((1,), (1,)), ((), ())),
                                    preferred_element_type=jnp.float32)
        return h * scale - shift

    def prelu(y):
        return jnp.where(y >= 0.0, y, alpha * y)

    b1 = b1_ref[...]
    b2 = b2_ref[...]

    h = prelu(inorm(conv(x, w1_ref, b1)))
    h = inorm(conv(h, w2_ref, b2)) + x           # residual add
    o_ref[...] = prelu(h).astype(o_ref.dtype)


def residual_block(x_ncl, w1, b1, w2, b2, alpha, *,
                   block_bytes_target=2 << 20,      # x-block budget (v7x-safe)
                   seg_bytes_target=2 << 20,        # segment-matrix budget
                   compute_dtype=jnp.bfloat16,      # MXU operand dtype for the convs
                   vmem_limit_bytes=48 * 1024 * 1024):
    """x_ncl: (N, C, L) float32 in PyTorch Conv1d layout. Returns (N, C, L)."""
    N, C, L = x_ncl.shape
    assert L >= 2, "ReflectionPad1d(1) needs L >= 2"
    assert w1.shape == (C, C, K) and w2.shape == (C, C, K)
    itemsize = 4  # activations streamed HBM<->VMEM as f32

    # smallest batch count whose fused (b*L) lane extent is a multiple of 128
    step = 128 // math.gcd(L, 128)

    # batch-tile sizing: amortize per-step overhead, stay within VMEM budgets,
    # keep the segment matrix small, and keep >= 2 grid steps for v7x megacore.
    units_cap_x = max(1, block_bytes_target // (C * step * L * itemsize))
    seg_side = max(step, math.isqrt(max(1, seg_bytes_target // (4 * L))))
    units_cap_seg = max(1, seg_side // step)
    units_needed = -(-N // step)                          # ceil(N / step)
    units = max(1, min(units_cap_x, units_cap_seg, units_needed))
    if units_needed >= 2:                                 # allow >= 2 grid steps
        units = max(1, min(units, -(-units_needed // 2)))
    b_tile = units * step
    n_blocks = -(-N // b_tile)                            # ceil: non-divisor N ok
    n_pad = n_blocks * b_tile
    tile = b_tile * L                                     # lanes per block (%128==0)

    # ---- layout plumbing (wrapper side): batch folded onto the lane axis ----
    x_t = jnp.transpose(x_ncl, (1, 0, 2))                 # (C, N, L)
    if n_pad != N:
        x_t = jnp.pad(x_t, ((0, 0), (0, n_pad - N), (0, 0)))
    x2 = x_t.reshape(C, n_pad * L).astype(jnp.float32)

    w1_t = jnp.transpose(w1, (2, 0, 1)).astype(jnp.float32)   # (3, C, C)
    w2_t = jnp.transpose(w2, (2, 0, 1)).astype(jnp.float32)
    b1_c = jnp.reshape(b1, (C, 1)).astype(jnp.float32)
    b2_c = jnp.reshape(b2, (C, 1)).astype(jnp.float32)
    alpha_s = jnp.reshape(alpha, (1, 1)).astype(jnp.float32)

    lane = jnp.arange(tile, dtype=jnp.int32)
    pos = lane % L
    first_mask = (pos == 0).astype(jnp.float32).reshape(1, tile)
    last_mask = (pos == L - 1).astype(jnp.float32).reshape(1, tile)
    seg = (
        (lane // L)[:, None] == jnp.arange(b_tile, dtype=jnp.int32)[None, :]
    ).astype(jnp.float32)                                  # (tile, b_tile)

    out2 = pl.pallas_call(
        functools.partial(resblock_kernel, compute_dtype),
        out_shape=jax.ShapeDtypeStruct((C, n_pad * L), jnp.float32),
        grid=(n_blocks,),
        in_specs=[
            pl.BlockSpec((C, tile), lambda n: (0, n)),          # activations
            pl.BlockSpec((K, C, C), lambda n: (0, 0, 0)),       # conv1 weight (resident)
            pl.BlockSpec((C, 1), lambda n: (0, 0)),             # conv1 bias
            pl.BlockSpec((K, C, C), lambda n: (0, 0, 0)),       # conv2 weight
            pl.BlockSpec((C, 1), lambda n: (0, 0)),             # conv2 bias
            pl.BlockSpec((tile, b_tile), lambda n: (0, 0)),     # segment matrix
            pl.BlockSpec((1, tile), lambda n: (0, 0)),          # l==0 mask
            pl.BlockSpec((1, tile), lambda n: (0, 0)),          # l==L-1 mask
            pl.BlockSpec(memory_space=pltpu.SMEM),              # shared PReLU alpha
        ],
        out_specs=pl.BlockSpec((C, tile), lambda n: (0, n)),
        compiler_params=pltpu.CompilerParams(
            dimension_semantics=("parallel",),    # disjoint batch-tile blocks
            vmem_limit_bytes=vmem_limit_bytes,
        ),
    )(x2, w1_t, b1_c, w2_t, b2_c, seg, first_mask, last_mask, alpha_s)

    out = out2.reshape(C, n_pad, L)[:, :N, :]
    return jnp.transpose(out, (1, 0, 2)).astype(x_ncl.dtype)


def reference_forward(x, w1, b1, w2, b2, alpha):
    """Pure-JAX reference matching the PyTorch module (NCL layout)."""
    def refl_pad(y):
        return jnp.concatenate([y[:, :, 1:2], y, y[:, :, -2:-1]], axis=2)

    def conv1d(y, w, b):
        out = jax.lax.conv_general_dilated(
            y, w, window_strides=(1,), padding="VALID",
            dimension_numbers=("NCH", "OIH", "NCH"))
        return out + b[None, :, None]

    def inorm(y):
        m = jnp.mean(y, axis=2, keepdims=True)
        v = jnp.mean((y - m) ** 2, axis=2, keepdims=True)
        return (y - m) / jnp.sqrt(v + EPS)

    def prelu(y):
        return jnp.where(y >= 0, y, alpha * y)

    out = prelu(inorm(conv1d(refl_pad(x), w1, b1)))
    out = inorm(conv1d(refl_pad(out), w2, b2))
    return prelu(out + x)


if __name__ == "__main__":
    # Small shapes: batch=2, channels=4 (in == out so residual add is valid), length=16
    N, C, L = 2, 4, 16

    key = jax.random.PRNGKey(0)
    kx, kw1, kb1, kw2, kb2 = jax.random.split(key, 5)

    x = jax.random.normal(kx, (N, C, L), dtype=jnp.float32)
    w1 = jax.random.normal(kw1, (C, C, K), dtype=jnp.float32) * 0.2   # (Cout, Cin, K)
    b1 = jax.random.normal(kb1, (C,), dtype=jnp.float32) * 0.1
    w2 = jax.random.normal(kw2, (C, C, K), dtype=jnp.float32) * 0.2
    b2 = jax.random.normal(kb2, (C,), dtype=jnp.float32) * 0.1
    alpha = jnp.float32(0.25)   # nn.PReLU() default init, shared for both applications

    ref = reference_forward(x, w1, b1, w2, b2, alpha)

    # exact path: f32 MXU operands, tight tolerance vs the f32 reference
    out_f32 = jax.block_until_ready(
        residual_block(x, w1, b1, w2, b2, alpha, compute_dtype=jnp.float32))
    assert out_f32.shape == (N, C, L)
    assert jnp.allclose(out_f32, ref, rtol=1e-4, atol=1e-4), \
        f"f32 path max abs err {jnp.max(jnp.abs(out_f32 - ref))}"

    # fast path: bf16 MXU operands (f32 accumulation / stats / residual)
    out_bf16 = jax.block_until_ready(
        residual_block(x, w1, b1, w2, b2, alpha, compute_dtype=jnp.bfloat16))
    assert jnp.allclose(out_bf16, ref, rtol=5e-2, atol=5e-2), \
        f"bf16 path max abs err {jnp.max(jnp.abs(out_bf16 - ref))}"

    # exercise a multi-block grid with batch padding (non-divisor N, >=2 steps)
    N2, C2, L2 = 5, 8, 128
    k2 = jax.random.split(key, 6)
    x_b = jax.random.normal(k2[0], (N2, C2, L2), dtype=jnp.float32)
    w1_b = jax.random.normal(k2[1], (C2, C2, K), dtype=jnp.float32) * 0.1
    b1_b = jax.random.normal(k2[2], (C2,), dtype=jnp.float32) * 0.1
    w2_b = jax.random.normal(k2[3], (C2, C2, K), dtype=jnp.float32) * 0.1
    b2_b = jax.random.normal(k2[4], (C2,), dtype=jnp.float32) * 0.1
    out_b = jax.block_until_ready(
        residual_block(x_b, w1_b, b1_b, w2_b, b2_b, alpha,
                       compute_dtype=jnp.float32))
    ref_b = reference_forward(x_b, w1_b, b1_b, w2_b, b2_b, alpha)
    assert jnp.allclose(out_b, ref_b, rtol=1e-4, atol=1e-4), \
        f"multi-block max abs err {jnp.max(jnp.abs(out_b - ref_b))}"

    print("KERNEL_OK")
</pallas_src>

<mosaic_0001>
module attributes {stable_mosaic.version = 11 : i64} {
  func.func @resblock_kernel(%arg0: i32, %arg1: memref<4x128xf32, #tpu.memory_space<vmem>>, %arg2: memref<3x4x4xf32, #tpu.memory_space<vmem>>, %arg3: memref<4x1xf32, #tpu.memory_space<vmem>>, %arg4: memref<3x4x4xf32, #tpu.memory_space<vmem>>, %arg5: memref<4x1xf32, #tpu.memory_space<vmem>>, %arg6: memref<128x8xf32, #tpu.memory_space<vmem>>, %arg7: memref<1x128xf32, #tpu.memory_space<vmem>>, %arg8: memref<1x128xf32, #tpu.memory_space<vmem>>, %arg9: memref<1x1xf32, #tpu.memory_space<smem>>, %arg10: memref<4x128xf32, #tpu.memory_space<vmem>>) attributes {dimension_semantics = [#tpu.dimension_semantics<parallel>], iteration_bounds = array<i64: 1>, scalar_prefetch = 0 : i64, scratch_operands = 0 : i64, tpu.core_type = #tpu.core_type<tc>, window_params = [{transform_indices = @transform_0, window_bounds = array<i64: 4, 128>}, {pipeline_mode = #tpu.pipeline_mode<synchronous>, transform_indices = @transform_1, window_bounds = array<i64: 3, 4, 4>}, {pipeline_mode = #tpu.pipeline_mode<synchronous>, transform_indices = @transform_2, window_bounds = array<i64: 4, 1>}, {pipeline_mode = #tpu.pipeline_mode<synchronous>, transform_indices = @transform_3, window_bounds = array<i64: 3, 4, 4>}, {pipeline_mode = #tpu.pipeline_mode<synchronous>, transform_indices = @transform_4, window_bounds = array<i64: 4, 1>}, {pipeline_mode = #tpu.pipeline_mode<synchronous>, transform_indices = @transform_5, window_bounds = array<i64: 128, 8>}, {pipeline_mode = #tpu.pipeline_mode<synchronous>, transform_indices = @transform_6, window_bounds = array<i64: 1, 128>}, {pipeline_mode = #tpu.pipeline_mode<synchronous>, transform_indices = @transform_7, window_bounds = array<i64: 1, 128>}, {transform_indices = @transform_8, window_bounds = array<i64: 1, 1>}, {transform_indices = @transform_9, window_bounds = array<i64: 4, 128>}]} {
    %c0 = arith.constant 0 : index
    %c0_0 = arith.constant 0 : index
    %0 = memref.load %arg9[%c0, %c0_0] : memref<1x1xf32, #tpu.memory_space<smem>>
    %c0_1 = arith.constant 0 : index
    %c0_2 = arith.constant 0 : index
    %1 = vector.load %arg1[%c0_1, %c0_2] : memref<4x128xf32, #tpu.memory_space<vmem>>, vector<4x128xf32>
    %c0_3 = arith.constant 0 : index
    %c0_4 = arith.constant 0 : index
    %2 = vector.load %arg6[%c0_3, %c0_4] : memref<128x8xf32, #tpu.memory_space<vmem>>, vector<128x8xf32>
    %c0_5 = arith.constant 0 : index
    %c0_6 = arith.constant 0 : index
    %3 = vector.load %arg7[%c0_5, %c0_6] : memref<1x128xf32, #tpu.memory_space<vmem>>, vector<1x128xf32>
    %c0_7 = arith.constant 0 : index
    %c0_8 = arith.constant 0 : index
    %4 = vector.load %arg8[%c0_7, %c0_8] : memref<1x128xf32, #tpu.memory_space<vmem>>, vector<1x128xf32>
    %c0_9 = arith.constant 0 : index
    %c0_10 = arith.constant 0 : index
    %5 = vector.load %arg3[%c0_9, %c0_10] : memref<4x1xf32, #tpu.memory_space<vmem>>, vector<4x1xf32>
    %c0_11 = arith.constant 0 : index
    %c0_12 = arith.constant 0 : index
    %6 = vector.load %arg5[%c0_11, %c0_12] : memref<4x1xf32, #tpu.memory_space<vmem>>, vector<4x1xf32>
    %7 = vector.extract_strided_slice %1 {offsets = [0, 127], sizes = [4, 1], strides = [1, 1]} : vector<4x128xf32> to vector<4x1xf32>
    %8 = vector.extract_strided_slice %1 {offsets = [0, 0], sizes = [4, 127], strides = [1, 1]} : vector<4x128xf32> to vector<4x127xf32>
    %9 = tpu.concatenate %7, %8 in 1 : vector<4x1xf32>, vector<4x127xf32> -> vector<4x128xf32>
    %10 = vector.extract_strided_slice %1 {offsets = [0, 1], sizes = [4, 127], strides = [1, 1]} : vector<4x128xf32> to vector<4x127xf32>
    %11 = vector.extract_strided_slice %1 {offsets = [0, 0], sizes = [4, 1], strides = [1, 1]} : vector<4x128xf32> to vector<4x1xf32>
    %12 = tpu.concatenate %10, %11 in 1 : vector<4x127xf32>, vector<4x1xf32> -> vector<4x128xf32>
    %13 = arith.subf %12, %9 : vector<4x128xf32>
    %14 = vector.broadcast %3 : vector<1x128xf32> to vector<4x128xf32>
    %15 = arith.mulf %14, %13 : vector<4x128xf32>
    %16 = arith.addf %9, %15 : vector<4x128xf32>
    %17 = arith.subf %9, %12 : vector<4x128xf32>
    %18 = vector.broadcast %4 : vector<1x128xf32> to vector<4x128xf32>
    %19 = arith.mulf %18, %17 : vector<4x128xf32>
    %20 = arith.addf %12, %19 : vector<4x128xf32>
    %c0_13 = arith.constant 0 : index
    %c0_14 = arith.constant 0 : index
    %c0_15 = arith.constant 0 : index
    %21 = vector.load %arg2[%c0_13, %c0_14, %c0_15] : memref<3x4x4xf32, #tpu.memory_space<vmem>>, vector<3x4x4xf32>
    %22 = vector.extract_strided_slice %21 {offsets = [0, 0, 0], sizes = [1, 4, 4], strides = [1, 1, 1]} : vector<3x4x4xf32> to vector<1x4x4xf32>
    %23 = vector.shape_cast %22 : vector<1x4x4xf32> to vector<4x4xf32>
    %cst = arith.constant dense<0.000000e+00> : vector<4x128xf32>
    %24 = tpu.matmul %23, %16, %cst {dimension_numbers = #tpu.dot_dimension_numbers<[1], [0], [0], [1], [0, 0, 1, 1], [], []>} : vector<4x4xf32>, vector<4x128xf32>, vector<4x128xf32> -> vector<4x128xf32>
    %25 = vector.extract_strided_slice %21 {offsets = [1, 0, 0], sizes = [1, 4, 4], strides = [1, 1, 1]} : vector<3x4x4xf32> to vector<1x4x4xf32>
    %26 = vector.shape_cast %25 : vector<1x4x4xf32> to vector<4x4xf32>
    %cst_16 = arith.constant dense<0.000000e+00> : vector<4x128xf32>
    %27 = tpu.matmul %26, %1, %cst_16 {dimension_numbers = #tpu.dot_dimension_numbers<[1], [0], [0], [1], [0, 0, 1, 1], [], []>} : vector<4x4xf32>, vector<4x128xf32>, vector<4x128xf32> -> vector<4x128xf32>
    %28 = arith.addf %24, %27 : vector<4x128xf32>
    %29 = vector.extract_strided_slice %21 {offsets = [2, 0, 0], sizes = [1, 4, 4], strides = [1, 1, 1]} : vector<3x4x4xf32> to vector<1x4x4xf32>
    %30 = vector.shape_cast %29 : vector<1x4x4xf32> to vector<4x4xf32>
    %cst_17 = arith.constant dense<0.000000e+00> : vector<4x128xf32>
    %31 = tpu.matmul %30, %20, %cst_17 {dimension_numbers = #tpu.dot_dimension_numbers<[1], [0], [0], [1], [0, 0, 1, 1], [], []>} : vector<4x4xf32>, vector<4x128xf32>, vector<4x128xf32> -> vector<4x128xf32>
    %32 = arith.addf %28, %31 : vector<4x128xf32>
    %33 = vector.broadcast %5 : vector<4x1xf32> to vector<4x128xf32>
    %34 = arith.addf %32, %33 : vector<4x128xf32>
    %cst_18 = arith.constant dense<0.000000e+00> : vector<4x8xf32>
    %35 = tpu.matmul %34, %2, %cst_18 {dimension_numbers = #tpu.dot_dimension_numbers<[1], [0], [0], [1], [0, 0, 1, 1], [], []>} : vector<4x128xf32>, vector<128x8xf32>, vector<4x8xf32> -> vector<4x8xf32>
    %36 = arith.mulf %34, %34 : vector<4x128xf32>
    %cst_19 = arith.constant dense<0.000000e+00> : vector<4x8xf32>
    %37 = tpu.matmul %36, %2, %cst_19 {dimension_numbers = #tpu.dot_dimension_numbers<[1], [0], [0], [1], [0, 0, 1, 1], [], []>} : vector<4x128xf32>, vector<128x8xf32>, vector<4x8xf32> -> vector<4x8xf32>
    %cst_20 = arith.constant 6.250000e-02 : f32
    %38 = vector.broadcast %cst_20 : f32 to vector<4x8xf32>
    %39 = arith.mulf %35, %38 : vector<4x8xf32>
    %cst_21 = arith.constant 6.250000e-02 : f32
    %40 = vector.broadcast %cst_21 : f32 to vector<4x8xf32>
    %41 = arith.mulf %37, %40 : vector<4x8xf32>
    %42 = arith.mulf %39, %39 : vector<4x8xf32>
    %43 = arith.subf %41, %42 : vector<4x8xf32>
    %cst_22 = arith.constant 0.000000e+00 : f32
    %44 = vector.broadcast %cst_22 : f32 to vector<4x8xf32>
    %45 = arith.maximumf %43, %44 : vector<4x8xf32>
    %cst_23 = arith.constant 9.99999974E-6 : f32
    %46 = vector.broadcast %cst_23 : f32 to vector<4x8xf32>
    %47 = arith.addf %45, %46 : vector<4x8xf32>
    %48 = math.rsqrt %47 : vector<4x8xf32>
    %cst_24 = arith.constant dense<0.000000e+00> : vector<4x128xf32>
    %49 = tpu.matmul %48, %2, %cst_24 {dimension_numbers = #tpu.dot_dimension_numbers<[1], [1], [0], [0], [0, 0, 1, 0], [], []>} : vector<4x8xf32>, vector<128x8xf32>, vector<4x128xf32> -> vector<4x128xf32>
    %50 = arith.mulf %39, %48 : vector<4x8xf32>
    %cst_25 = arith.constant dense<0.000000e+00> : vector<4x128xf32>
    %51 = tpu.matmul %50, %2, %cst_25 {dimension_numbers = #tpu.dot_dimension_numbers<[1], [1], [0], [0], [0, 0, 1, 0], [], []>} : vector<4x8xf32>, vector<128x8xf32>, vector<4x128xf32> -> vector<4x128xf32>
    %52 = arith.mulf %34, %49 : vector<4x128xf32>
    %53 = arith.subf %52, %51 : vector<4x128xf32>
    %cst_26 = arith.constant 0.000000e+00 : f32
    %54 = vector.broadcast %cst_26 : f32 to vector<4x128xf32>
    %55 = arith.cmpf oge, %53, %54 : vector<4x128xf32>
    %56 = vector.broadcast %0 : f32 to vector<4x128xf32>
    %57 = arith.mulf %56, %53 : vector<4x128xf32>
    %58 = arith.select %55, %53, %57 : vector<4x128xi1>, vector<4x128xf32>
    %59 = vector.extract_strided_slice %58 {offsets = [0, 127], sizes = [4, 1], strides = [1, 1]} : vector<4x128xf32> to vector<4x1xf32>
    %60 = vector.extract_strided_slice %58 {offsets = [0, 0], sizes = [4, 127], strides = [1, 1]} : vector<4x128xf32> to vector<4x127xf32>
    %61 = tpu.concatenate %59, %60 in 1 : vector<4x1xf32>, vector<4x127xf32> -> vector<4x128xf32>
    %62 = vector.extract_strided_slice %58 {offsets = [0, 1], sizes = [4, 127], strides = [1, 1]} : vector<4x128xf32> to vector<4x127xf32>
    %63 = vector.extract_strided_slice %58 {offsets = [0, 0], sizes = [4, 1], strides = [1, 1]} : vector<4x128xf32> to vector<4x1xf32>
    %64 = tpu.concatenate %62, %63 in 1 : vector<4x127xf32>, vector<4x1xf32> -> vector<4x128xf32>
    %65 = arith.subf %64, %61 : vector<4x128xf32>
    %66 = vector.broadcast %3 : vector<1x128xf32> to vector<4x128xf32>
    %67 = arith.mulf %66, %65 : vector<4x128xf32>
    %68 = arith.addf %61, %67 : vector<4x128xf32>
    %69 = arith.subf %61, %64 : vector<4x128xf32>
    %70 = vector.broadcast %4 : vector<1x128xf32> to vector<4x128xf32>
    %71 = arith.mulf %70, %69 : vector<4x128xf32>
    %72 = arith.addf %64, %71 : vector<4x128xf32>
    %c0_27 = arith.constant 0 : index
    %c0_28 = arith.constant 0 : index
    %c0_29 = arith.constant 0 : index
    %73 = vector.load %arg4[%c0_27, %c0_28, %c0_29] : memref<3x4x4xf32, #tpu.memory_space<vmem>>, vector<3x4x4xf32>
    %74 = vector.extract_strided_slice %73 {offsets = [0, 0, 0], sizes = [1, 4, 4], strides = [1, 1, 1]} : vector<3x4x4xf32> to vector<1x4x4xf32>
    %75 = vector.shape_cast %74 : vector<1x4x4xf32> to vector<4x4xf32>
    %cst_30 = arith.constant dense<0.000000e+00> : vector<4x128xf32>
    %76 = tpu.matmul %75, %68, %cst_30 {dimension_numbers = #tpu.dot_dimension_numbers<[1], [0], [0], [1], [0, 0, 1, 1], [], []>} : vector<4x4xf32>, vector<4x128xf32>, vector<4x128xf32> -> vector<4x128xf32>
    %77 = vector.extract_strided_slice %73 {offsets = [1, 0, 0], sizes = [1, 4, 4], strides = [1, 1, 1]} : vector<3x4x4xf32> to vector<1x4x4xf32>
    %78 = vector.shape_cast %77 : vector<1x4x4xf32> to vector<4x4xf32>
    %cst_31 = arith.constant dense<0.000000e+00> : vector<4x128xf32>
    %79 = tpu.matmul %78, %58, %cst_31 {dimension_numbers = #tpu.dot_dimension_numbers<[1], [0], [0], [1], [0, 0, 1, 1], [], []>} : vector<4x4xf32>, vector<4x128xf32>, vector<4x128xf32> -> vector<4x128xf32>
    %80 = arith.addf %76, %79 : vector<4x128xf32>
    %81 = vector.extract_strided_slice %73 {offsets = [2, 0, 0], sizes = [1, 4, 4], strides = [1, 1, 1]} : vector<3x4x4xf32> to vector<1x4x4xf32>
    %82 = vector.shape_cast %81 : vector<1x4x4xf32> to vector<4x4xf32>
    %cst_32 = arith.constant dense<0.000000e+00> : vector<4x128xf32>
    %83 = tpu.matmul %82, %72, %cst_32 {dimension_numbers = #tpu.dot_dimension_numbers<[1], [0], [0], [1], [0, 0, 1, 1], [], []>} : vector<4x4xf32>, vector<4x128xf32>, vector<4x128xf32> -> vector<4x128xf32>
    %84 = arith.addf %80, %83 : vector<4x128xf32>
    %85 = vector.broadcast %6 : vector<4x1xf32> to vector<4x128xf32>
    %86 = arith.addf %84, %85 : vector<4x128xf32>
    %cst_33 = arith.constant dense<0.000000e+00> : vector<4x8xf32>
    %87 = tpu.matmul %86, %2, %cst_33 {dimension_numbers = #tpu.dot_dimension_numbers<[1], [0], [0], [1], [0, 0, 1, 1], [], []>} : vector<4x128xf32>, vector<128x8xf32>, vector<4x8xf32> -> vector<4x8xf32>
    %88 = arith.mulf %86, %86 : vector<4x128xf32>
    %cst_34 = arith.constant dense<0.000000e+00> : vector<4x8xf32>
    %89 = tpu.matmul %88, %2, %cst_34 {dimension_numbers = #tpu.dot_dimension_numbers<[1], [0], [0], [1], [0, 0, 1, 1], [], []>} : vector<4x128xf32>, vector<128x8xf32>, vector<4x8xf32> -> vector<4x8xf32>
    %cst_35 = arith.constant 6.250000e-02 : f32
    %90 = vector.broadcast %cst_35 : f32 to vector<4x8xf32>
    %91 = arith.mulf %87, %90 : vector<4x8xf32>
    %cst_36 = arith.constant 6.250000e-02 : f32
    %92 = vector.broadcast %cst_36 : f32 to vector<4x8xf32>
    %93 = arith.mulf %89, %92 : vector<4x8xf32>
    %94 = arith.mulf %91, %91 : vector<4x8xf32>
    %95 = arith.subf %93, %94 : vector<4x8xf32>
    %cst_37 = arith.constant 0.000000e+00 : f32
    %96 = vector.broadcast %cst_37 : f32 to vector<4x8xf32>
    %97 = arith.maximumf %95, %96 : vector<4x8xf32>
    %cst_38 = arith.constant 9.99999974E-6 : f32
    %98 = vector.broadcast %cst_38 : f32 to vector<4x8xf32>
    %99 = arith.addf %97, %98 : vector<4x8xf32>
    %100 = math.rsqrt %99 : vector<4x8xf32>
    %cst_39 = arith.constant dense<0.000000e+00> : vector<4x128xf32>
    %101 = tpu.matmul %100, %2, %cst_39 {dimension_numbers = #tpu.dot_dimension_numbers<[1], [1], [0], [0], [0, 0, 1, 0], [], []>} : vector<4x8xf32>, vector<128x8xf32>, vector<4x128xf32> -> vector<4x128xf32>
    %102 = arith.mulf %91, %100 : vector<4x8xf32>
    %cst_40 = arith.constant dense<0.000000e+00> : vector<4x128xf32>
    %103 = tpu.matmul %102, %2, %cst_40 {dimension_numbers = #tpu.dot_dimension_numbers<[1], [1], [0], [0], [0, 0, 1, 0], [], []>} : vector<4x8xf32>, vector<128x8xf32>, vector<4x128xf32> -> vector<4x128xf32>
    %104 = arith.mulf %86, %101 : vector<4x128xf32>
    %105 = arith.subf %104, %103 : vector<4x128xf32>
    %106 = arith.addf %105, %1 : vector<4x128xf32>
    %cst_41 = arith.constant 0.000000e+00 : f32
    %107 = vector.broadcast %cst_41 : f32 to vector<4x128xf32>
    %108 = arith.cmpf oge, %106, %107 : vector<4x128xf32>
    %109 = vector.broadcast %0 : f32 to vector<4x128xf32>
    %110 = arith.mulf %109, %106 : vector<4x128xf32>
    %111 = arith.select %108, %106, %110 : vector<4x128xi1>, vector<4x128xf32>
    %c0_42 = arith.constant 0 : index
    %c0_43 = arith.constant 0 : index
    %112 = vector.load %arg10[%c0_42, %c0_43] : memref<4x128xf32, #tpu.memory_space<vmem>>, vector<4x128xf32>
    tpu.vector_store %arg10[%c0_42, %c0_43], %111 {strides = array<i32>} : memref<4x128xf32, #tpu.memory_space<vmem>>, vector<4x128xf32>,
    return
  }
  func.func @transform_0(%arg0: i32) -> (i32, i32) {
    %c0_i32 = arith.constant 0 : i32
    %c0_i32_0 = arith.constant 0 : i32
    return %c0_i32, %arg0 : i32, i32
  }
  func.func @transform_1(%arg0: i32) -> (i32, i32, i32) {
    %c0_i32 = arith.constant 0 : i32
    %c0_i32_0 = arith.constant 0 : i32
    %c0_i32_1 = arith.constant 0 : i32
    %c0_i32_2 = arith.constant 0 : i32
    return %c0_i32, %c0_i32_0, %c0_i32_1 : i32, i32, i32
  }
  func.func @transform_2(%arg0: i32) -> (i32, i32) {
    %c0_i32 = arith.constant 0 : i32
    %c0_i32_0 = arith.constant 0 : i32
    %c0_i32_1 = arith.constant 0 : i32
    return %c0_i32, %c0_i32_0 : i32, i32
  }
  func.func @transform_3(%arg0: i32) -> (i32, i32, i32) {
    %c0_i32 = arith.constant 0 : i32
    %c0_i32_0 = arith.constant 0 : i32
    %c0_i32_1 = arith.constant 0 : i32
    %c0_i32_2 = arith.constant 0 : i32
    return %c0_i32, %c0_i32_0, %c0_i32_1 : i32, i32, i32
  }
  func.func @transform_4(%arg0: i32) -> (i32, i32) {
    %c0_i32 = arith.constant 0 : i32
    %c0_i32_0 = arith.constant 0 : i32
    %c0_i32_1 = arith.constant 0 : i32
    return %c0_i32, %c0_i32_0 : i32, i32
  }
  func.func @transform_5(%arg0: i32) -> (i32, i32) {
    %c0_i32 = arith.constant 0 : i32
    %c0_i32_0 = arith.constant 0 : i32
    %c0_i32_1 = arith.constant 0 : i32
    return %c0_i32, %c0_i32_0 : i32, i32
  }
  func.func @transform_6(%arg0: i32) -> (i32, i32) {
    %c0_i32 = arith.constant 0 : i32
    %c0_i32_0 = arith.constant 0 : i32
    %c0_i32_1 = arith.constant 0 : i32
    return %c0_i32, %c0_i32_0 : i32, i32
  }
  func.func @transform_7(%arg0: i32) -> (i32, i32) {
    %c0_i32 = arith.constant 0 : i32
    %c0_i32_0 = arith.constant 0 : i32
    %c0_i32_1 = arith.constant 0 : i32
    return %c0_i32, %c0_i32_0 : i32, i32
  }
  func.func @transform_8(%arg0: i32) -> (i32, i32) {
    %c0_i32 = arith.constant 0 : i32
    %c0_i32_0 = arith.constant 0 : i32
    %c0_i32_1 = arith.constant 0 : i32
    return %c0_i32, %c0_i32_0 : i32, i32
  }
  func.func @transform_9(%arg0: i32) -> (i32, i32) {
    %c0_i32 = arith.constant 0 : i32
    %c0_i32_0 = arith.constant 0 : i32
    return %c0_i32, %arg0 : i32, i32
  }
}

</mosaic_0001>

<bundles_post_ra>
// kernel: tpu_custom_call.1
= control target key start
LH: loop header
LB: loop body
LE: loop exit
PB: predicated region body
PF: predicated region fallthrough
CT: control target
= control target key end

     0   :  { %s2037_s11 = smov 1   ;;  %vm88_vm0 = vcmask 1043456   ;;  %vm84_vm1 = vcmask 31744   ;;  %v2038_v1 = vmov 0.0   ;;  %vm2039_vm2 = vmmov 0   ;;  %s2480_s0 = inlined_call_operand.vmem [shape: f32[4,128], index: 0, kind: input, shape index: {}]   ;;  %s2481_s1 = inlined_call_operand.vmem [shape: f32[3,4,4], index: 1, kind: input, shape index: {}]   ;;  %s2482_s2 = inlined_call_operand.vmem [shape: f32[4,1], index: 2, kind: input, shape index: {}]   ;;  %s2483_s3 = inlined_call_operand.vmem [shape: f32[3,4,4], index: 3, kind: input, shape index: {}]   ;;  %s2484_s4 = inlined_call_operand.vmem [shape: f32[4,1], index: 4, kind: input, shape index: {}]   ;;  %s2485_s5 = inlined_call_operand.vmem [shape: f32[128,8], index: 5, kind: input, shape index: {}]   ;;  %s2486_s6 = inlined_call_operand.vmem [shape: f32[1,128], index: 6, kind: input, shape index: {}]   ;;  %s2487_s7 = inlined_call_operand.vmem [shape: f32[1,128], index: 7, kind: input, shape index: {}]   ;;  %s2488_s8 = inlined_call_operand.<no memory space> [shape: f32[1,1], index: 8, kind: input, shape index: {}]   ;;  %s2489_s9 = inlined_call_operand.hbm [shape: f32[4,128], index: 9, kind: output, shape index: {}]  }
   0x1   :  { %v2097_v0 = vld [vmem:[%s2480_s0] sm:$0xf]  ;;  %1466 = vmatprep.subr.mxu0 %v2038_v1  ;;  %1468 = vmatprep.mubr.msk.f32.mxu0 %vm2039_vm2, %v2038_v1  ;;  %v82_v2 = vld [vmem:[%s2481_s1 + $0x4] sm:$0xf] }
   0x2   :  { %57 = vrot.lane.b32.xlu0 %v2097_v0, %s2037_s11  ;;  %1467 = vmatpush3.msk.msra.mxu0 %vm88_vm0, %v2097_v0  ;;  %v54_v3 = vld [vmem:[%s2482_s2] sm:$0xf] }
   0x3   :  { %1471 = vmatprep.subr.mxu1 %v2038_v1  ;;  %1469 = vmatmul.mubr.msk.f32.vlgmr.msra.gmra.mrb[0].mxu0 %vm84_vm1, %v82_v2 }
   0x4   :  { %1476 = vmatprep.subr.mxu0 %v2038_v1 }
   0x5   :  { %15 = vsyncpa [#allocation4], 0  ;;  %s2040_s15 = smov 127   ;;  %1473 = vmatprep.mubr.msk.f32.mxu1 %vm2039_vm2, %v2038_v1  ;;  %1478 = vmatprep.mubr.msk.f32.mxu0 %vm2039_vm2, %v2038_v1  ;;  %v2041_v4 = vmov 0   ;;  %v2124_v6 = vld [vmem:[%s2486_s6] ss:$0 sm:$0xff] }
   0x6   :  { %60 = vrot.lane.b32.xlu0 %v2097_v0, %s2040_s15  ;;  %2007 = vset.pattern.permute.xlu1 %v2041_v4  ;;  %v2129_v7 = vld [vmem:[%s2487_s7] ss:$0 sm:$0xff]  ;;  %v37_v14 = vld [vmem:[%s2485_s5 + $0x8] sm:$0xff]  ;;  %v38_v20 = vld [vmem:[%s2485_s5 + $0x10] sm:$0xff]  ;;  %v2042_v22 = vmov 0.0|0.0   ;;  %vm468_vm3 = vcmask 64512  }
   0x7   :  { %316 = vperm.xlu1 %2007, %v54_v3   ;;  %2008 = vset.pattern.permute.xlu0 %v2041_v4  ;;  %v36_v13 = vld [vmem:[%s2485_s5] sm:$0xff]  ;;  %v83_v18 = vld [vmem:[%s2481_s1 + $0x8] sm:$0xf]  ;;  %v39_v21 = vld [vmem:[%s2485_s5 + $0x18] sm:$0xff] }
   0x8   :  { %v81_v17 = vld [vmem:[%s2481_s1] sm:$0xf]  ;;  %v2145_v19 = vpack.c.bf16 %v37_v14, %v36_v13  ;;  %v2161_v23 = vpack.c.bf16 %v39_v21, %v38_v20  ;;  %v41_v25 = vld [vmem:[%s2485_s5 + $0x28] sm:$0xff]  ;;  %v42_v27 = vld [vmem:[%s2485_s5 + $0x30] sm:$0xff] }
   0x9   :  { %v40_v24 = vld [vmem:[%s2485_s5 + $0x20] sm:$0xff]  ;;  %v43_v28 = vld [vmem:[%s2485_s5 + $0x38] sm:$0xff]  ;;  %v45_v31 = vld [vmem:[%s2485_s5 + $0x48] sm:$0xff] }
   0xa   :  { %v2177_v26 = vpack.c.bf16 %v41_v25, %v40_v24  ;;  %v2189_v29 = vpack.c.bf16 %v43_v28, %v42_v27  ;;  %v44_v30 = vld [vmem:[%s2485_s5 + $0x40] sm:$0xff]  ;;  %v46_v33 = vld [vmem:[%s2485_s5 + $0x50] sm:$0xff]  ;;  %v47_v34 = vld [vmem:[%s2485_s5 + $0x58] sm:$0xff] }
   0xb   :  { %v2201_v32 = vpack.c.bf16 %v45_v31, %v44_v30  ;;  %v2213_v35 = vpack.c.bf16 %v47_v34, %v46_v33  ;;  %v48_v36 = vld [vmem:[%s2485_s5 + $0x60] sm:$0xff]  ;;  %v49_v37 = vld [vmem:[%s2485_s5 + $0x68] sm:$0xff]  ;;  %v50_v39 = vld [vmem:[%s2485_s5 + $0x70] sm:$0xff] }
   0xc   :  { %v2227_v38 = vpack.c.bf16 %v49_v37, %v48_v36  ;;  %v51_v40 = vld [vmem:[%s2485_s5 + $0x78] sm:$0xff]  ;;  %vm2247_vm4 = vmpackc.low %vm468_vm3, %vm468_vm3  ;;  %v683_v30 = vld [vmem:[%s2483_s3] sm:$0xf] }
   0xd   :  { %v2239_v41 = vpack.c.bf16 %v51_v40, %v50_v39  ;;  %v685_v31 = vld [vmem:[%s2483_s3 + $0x8] sm:$0xf] }
  0x74   :  { %v58_v5 = vpop.permute.xlu0 %57 }
  0x78   :  { %v61_v8 = vpop.permute.xlu0 %60 }
  0x79   :  { %v63_v9 = vsub.f32 %v61_v8, %v58_v5  ;;  %v72_v10 = vsub.f32 %v58_v5, %v61_v8 }
  0x7b   :  { %v70_v11 = vmul.f32 %v2124_v6, %v63_v9  ;;  %v79_v12 = vmul.f32 %v2129_v7, %v72_v10  ;;  %v667_v10 = vstv %s2488_s8 }
  0x7d   :  { %v80_v15 = vadd.f32 %v79_v12, %v61_v8  ;;  %v71_v16 = vadd.f32 %v70_v11, %v58_v5 }
  0x7f   :  { %1472 = vmatpush3.msk.msra.mxu1 %vm88_vm0, %v71_v16  ;;  %1477 = vmatpush3.msk.msra.mxu0 %vm88_vm0, %v80_v15  ;;  %v684_v15 = vld [vmem:[%s2483_s3 + $0x4] sm:$0xf]  ;;  %v55_v16 = vld [vmem:[%s2484_s4] sm:$0xf]  ;;  %s2043_s3 = smov [#allocation3]  }
  0x80   :  { %1474 = vmatmul.mubr.msk.f32.vlgmr.msra.gmra.mrb[0].mxu1 %vm84_vm1, %v81_v17  ;;  %1479 = vmatmul.mubr.msk.f32.vlgmr.msra.gmra.mrb[2].mxu0 %vm84_vm1, %v83_v18  ;;  %s1228_s16 = sshll.u32 %s2043_s3, 4  ;;  %s1229_s16 = int_to_ptr.vmem [resolvable:$true] %s1228_s16 }
  0x81   :  { %1776 = vmatprep.subr.bf16.mxu1 %v2042_v22  ;;  %1800 = vmatprep.subr.bf16.mxu0 %v2042_v22  ;;  %s2013_s18 = scalar_lea.vmem %s1229_s16, 64  ;;  %p2018_p1 = scmp.lt.s32.totalorder %s1229_s16, %s1229_s16 }
  0x82   :  { %1778 = vmatpush3.bf16.msra.mxu1 %v2145_v19  ;;  %1802 = vmatpush3.bf16.msra.mxu0 %v2145_v19  ;;  %p2014_p0 = scmp.ne.s32.totalorder %s1229_s16, %s2013_s18  ;;  %p2019_p2 = scmp.lt.s32.totalorder %s2013_s18, %s2013_s18 }
  0x83   :  { %1779 = vmatprep.subr.bf16.mxu1 %v2042_v22  ;;  %1803 = vmatprep.subr.bf16.mxu0 %v2042_v22 }
  0x84   :  { %1513 = vmatprep.mubr.msk.f32.mxu1 %vm2039_vm2, %v2038_v1  ;;  %1548 = vmatprep.mubr.msk.f32.mxu0 %vm2039_vm2, %v2038_v1  ;;  %p2020_p3 = por %p2019_p2, %p2018_p1 }
  0x86   :  { %1781 = vmatpush3.bf16.msra.mxu1 %v2161_v23  ;;  %1805 = vmatpush3.bf16.msra.mxu0 %v2161_v23  ;;  %v317_v49 = vpop.permute.xlu1 %316  ;;  %p2021_p4 = pnand %p2020_p3, %p2014_p0 }
  0x87   :  { %1782 = vmatprep.subr.bf16.mxu1 %v2042_v22  ;;  %1806 = vmatprep.subr.bf16.mxu0 %v2042_v22 }
  0x8a   :  { %1784 = vmatpush3.bf16.msra.mxu1 %v2177_v26  ;;  %1808 = vmatpush3.bf16.msra.mxu0 %v2177_v26 }
  0x8b   :  { %1785 = vmatprep.subr.bf16.mxu1 %v2042_v22  ;;  %1809 = vmatprep.subr.bf16.mxu0 %v2042_v22 }
  0x8e   :  { %1787 = vmatpush3.bf16.msra.mxu1 %v2189_v29  ;;  %1811 = vmatpush3.bf16.msra.mxu0 %v2189_v29 }
  0x8f   :  { %1788 = vmatprep.subr.bf16.mxu1 %v2042_v22  ;;  %1812 = vmatprep.subr.bf16.mxu0 %v2042_v22 }
  0x92   :  { %1790 = vmatpush3.bf16.msra.mxu1 %v2201_v32  ;;  %1814 = vmatpush3.bf16.msra.mxu0 %v2201_v32 }
  0x93   :  { %1791 = vmatprep.subr.bf16.mxu1 %v2042_v22  ;;  %1815 = vmatprep.subr.bf16.mxu0 %v2042_v22 }
  0x96   :  { %1793 = vmatpush3.bf16.msra.mxu1 %v2213_v35  ;;  %1817 = vmatpush3.bf16.msra.mxu0 %v2213_v35 }
  0x97   :  { %1794 = vmatprep.subr.bf16.mxu1 %v2042_v22  ;;  %1818 = vmatprep.subr.bf16.mxu0 %v2042_v22 }
  0x9a   :  { %1796 = vmatpush3.bf16.msra.mxu1 %v2227_v38  ;;  %1820 = vmatpush3.bf16.msra.mxu0 %v2227_v38 }
  0x9b   :  { %1797 = vmatprep.subr.bf16.mxu1 %v2042_v22  ;;  %1821 = vmatprep.subr.bf16.mxu0 %v2042_v22 }
  0x9e   :  { %1799 = vmatpush3.bf16.msra.mxu1 %v2239_v41  ;;  %1823 = vmatpush3.bf16.msra.mxu0 %v2239_v41 }
  0x9f   :  { %1824 = vmatprep.subr.bf16.mxu1 %v2042_v22  ;;  %1856 = vmatprep.subr.bf16.mxu0 %v2042_v22 }
  0xd6   :  { %v157_v42 = vpop.f32.mrb[0].mxu0 }
  0xd7   :  { %v1470_v43 = vpop.f32.mrb[1].mxu0 }
 0x153   :  { %v233_v44 = vpop.f32.mrb[0].mxu1  ;;  %v309_v45 = vpop.f32.mrb[2].mxu0 }
 0x154   :  { %v234_v46 = vadd.f32 %v233_v44, %v157_v42  ;;  %v1475_v47 = vpop.f32.mrb[1].mxu1  ;;  %v1480_v48 = vpop.f32.mrb[3].mxu0 }
 0x156   :  { %v313_v50 = vadd.f32 %v309_v45, %v234_v46 }
 0x158   :  { %v319_v51 = vadd.f32 %v317_v49, %v313_v50 }
 0x15a   :  { %v390_v53 = vmul.f32 %v319_v51, %v319_v51  ;;  %1514 = vmatmul.mubr.f32.vlgmr.msra.gmra.mrb[2].mxu1 %v319_v51 }
 0x15b   :  { %1827 = vmatpush3.bf16.xpose.msk.msra.mxu1 %vm2247_vm4, %v2145_v19  ;;  %1583 = vmatprep.mubr.msk.f32.mxu1 %vm2039_vm2, %v2038_v1 }
 0x15c   :  { %1549 = vmatmul.mubr.f32.vlgmr.msra.gmra.mrb[4].mxu0 %v390_v53  ;;  %1828 = vmatprep.subr.bf16.mxu1 %v2042_v22 }
 0x15d   :  { %1859 = vmatpush3.bf16.xpose.msk.msra.mxu0 %vm2247_vm4, %v2145_v19  ;;  %1618 = vmatprep.mubr.msk.f32.mxu0 %vm2039_vm2, %v2038_v1 }
 0x15e   :  { %1860 = vmatprep.subr.bf16.mxu0 %v2042_v22 }
 0x163   :  { %1831 = vmatpush3.bf16.xpose.msk.msra.mxu1 %vm2247_vm4, %v2161_v23 }
 0x164   :  { %1832 = vmatprep.subr.bf16.mxu1 %v2042_v22 }
 0x165   :  { %1863 = vmatpush3.bf16.xpose.msk.msra.mxu0 %vm2247_vm4, %v2161_v23 }
 0x166   :  { %1864 = vmatprep.subr.bf16.mxu0 %v2042_v22 }
 0x16b   :  { %1835 = vmatpush3.bf16.xpose.msk.msra.mxu1 %vm2247_vm4, %v2177_v26 }
 0x16c   :  { %1836 = vmatprep.subr.bf16.mxu1 %v2042_v22 }
 0x16d   :  { %1867 = vmatpush3.bf16.xpose.msk.msra.mxu0 %vm2247_vm4, %v2177_v26 }
 0x16e   :  { %1868 = vmatprep.subr.bf16.mxu0 %v2042_v22 }
 0x173   :  { %1839 = vmatpush3.bf16.xpose.msk.msra.mxu1 %vm2247_vm4, %v2189_v29 }
 0x174   :  { %1840 = vmatprep.subr.bf16.mxu1 %v2042_v22 }
 0x175   :  { %1871 = vmatpush3.bf16.xpose.msk.msra.mxu0 %vm2247_vm4, %v2189_v29 }
 0x176   :  { %1872 = vmatprep.subr.bf16.mxu0 %v2042_v22 }
 0x17b   :  { %1843 = vmatpush3.bf16.xpose.msk.msra.mxu1 %vm2247_vm4, %v2201_v32 }
 0x17c   :  { %1844 = vmatprep.subr.bf16.mxu1 %v2042_v22 }
 0x17d   :  { %1875 = vmatpush3.bf16.xpose.msk.msra.mxu0 %vm2247_vm4, %v2201_v32 }
 0x17e   :  { %1876 = vmatprep.subr.bf16.mxu0 %v2042_v22 }
 0x183   :  { %1847 = vmatpush3.bf16.xpose.msk.msra.mxu1 %vm2247_vm4, %v2213_v35 }
 0x184   :  { %1848 = vmatprep.subr.bf16.mxu1 %v2042_v22 }
 0x185   :  { %1879 = vmatpush3.bf16.xpose.msk.msra.mxu0 %vm2247_vm4, %v2213_v35 }
 0x186   :  { %1880 = vmatprep.subr.bf16.mxu0 %v2042_v22 }
 0x18b   :  { %1851 = vmatpush3.bf16.xpose.msk.msra.mxu1 %vm2247_vm4, %v2227_v38 }
 0x18c   :  { %1852 = vmatprep.subr.bf16.mxu1 %v2042_v22 }
 0x18d   :  { %1883 = vmatpush3.bf16.xpose.msk.msra.mxu0 %vm2247_vm4, %v2227_v38 }
 0x18e   :  { %1884 = vmatprep.subr.bf16.mxu0 %v2042_v22 }
 0x193   :  { %1855 = vmatpush3.bf16.xpose.msk.msra.mxu1 %vm2247_vm4, %v2239_v41 }
 0x194   :  { %1621 = vmatprep.subr.mxu1 %v2038_v1 }
 0x195   :  { %1887 = vmatpush3.bf16.xpose.msk.msra.mxu0 %vm2247_vm4, %v2239_v41 }
 0x196   :  { %1626 = vmatprep.subr.mxu0 %v2038_v1 }
 0x22d   :  { %v386_v54 = vpop.f32.mrb[2].mxu1 }
 0x22e   :  { %v461_v55 = vmul.f32 0.0625, %v386_v54  ;;  %v1515_v56 = vpop.f32.mrb[3].mxu1 }
 0x22f   :  { %v457_v57 = vpop.f32.mrb[4].mxu0 }
 0x230   :  { %v463_v58 = vmul.f32 %v461_v55, %v461_v55  ;;  %v462_v59 = vmul.f32 0.0625, %v457_v57  ;;  %v1550_v60 = vpop.f32.mrb[5].mxu0 }
 0x232   :  { %v464_v61 = vsub.f32 %v462_v59, %v463_v58 }
 0x234   :  { %v465_v62 = vmax.f32 %v464_v61, 0.0 }
 0x236   :  { %v466_v63 = vadd.f32 1e-05, %v465_v62 }
 0x238   :  { %2009 = vrsqrt.f32 %v466_v63 }
 0x242   :  { %v2010_v2 = vpop.eup %2009 }
 0x243   :  { %1584 = vmatmul.mubr.msk.f32.vlgmr.msra.gmra.mrb[4].mxu1 %vm468_vm3, %v2010_v2  ;;  %v590_v3 = vmul.f32 %v2010_v2, %v461_v55 }
 0x244   :  { %1623 = vmatprep.mubr.msk.f32.mxu1 %vm2039_vm2, %v2038_v1 }
 0x245   :  { %1619 = vmatmul.mubr.msk.f32.vlgmr.msra.gmra.mrb[6].mxu0 %vm468_vm3, %v590_v3 }
 0x246   :  { %1628 = vmatprep.mubr.msk.f32.mxu0 %vm2039_vm2, %v2038_v1 }
 0x316   :  { %v586_v4 = vpop.f32.mrb[4].mxu1 }
 0x317   :  { %v664_v5 = vmul.f32 %v586_v4, %v319_v51  ;;  %v1585_v8 = vpop.f32.mrb[5].mxu1 }
 0x318   :  { %v660_v9 = vpop.f32.mrb[6].mxu0 }
 0x319   :  { %v665_v11 = vsub.f32 %v664_v5, %v660_v9  ;;  %v1620_v12 = vpop.f32.mrb[7].mxu0 }
 0x31b   :  { %v668_v13 = vmul.f32 %v667_v10, %v665_v11  ;;  %vm666_vm5 = vcmp.ge.f32.partialorder %v665_v11, 0.0 }
 0x31d   :  { %v669_v14 = vsel %vm666_vm5, %v665_v11, %v668_v13 }
 0x31e   :  { %674 = vrot.lane.b32.xlu0 %v669_v14, %s2040_s15  ;;  %671 = vrot.lane.b32.xlu1 %v669_v14, %s2037_s11 }
 0x31f   :  { %1622 = vmatpush3.msk.msra.mxu1 %vm88_vm0, %v669_v14 }
 0x320   :  { %1624 = vmatmul.mubr.msk.f32.vlgmr.msra.gmra.mrb[6].mxu1 %vm84_vm1, %v684_v15  ;;  %1631 = vmatprep.subr.mxu1 %v2038_v1 }
 0x321   :  { %1633 = vmatprep.mubr.msk.f32.mxu1 %vm2039_vm2, %v2038_v1 }
 0x322   :  { %916 = vperm.xlu1 %2007, %v55_v16  }
 0x390   :  { %v675_v17 = vpop.permute.xlu0 %674  ;;  %v672_v18 = vpop.permute.xlu1 %671 }
 0x391   :  { %v677_v20 = vsub.f32 %v675_v17, %v672_v18  ;;  %v680_v21 = vsub.f32 %v672_v18, %v675_v17 }
 0x393   :  { %v678_v24 = vmul.f32 %v2124_v6, %v677_v20  ;;  %v681_v25 = vmul.f32 %v2129_v7, %v680_v21 }
 0x395   :  { %v679_v27 = vadd.f32 %v678_v24, %v672_v18  ;;  %v682_v28 = vadd.f32 %v681_v25, %v675_v17 }
 0x397   :  { %1627 = vmatpush3.msk.msra.mxu0 %vm88_vm0, %v679_v27  ;;  %1632 = vmatpush3.msk.msra.mxu1 %vm88_vm0, %v682_v28 }
 0x398   :  { %1629 = vmatmul.mubr.msk.f32.vlgmr.msra.gmra.mrb[8].mxu0 %vm84_vm1, %v683_v30  ;;  %1634 = vmatmul.mubr.msk.f32.vlgmr.msra.gmra.mrb[8].mxu1 %vm84_vm1, %v685_v31 }
 0x399   :  { %1888 = vmatprep.subr.bf16.mxu0 %v2042_v22  ;;  %1912 = vmatprep.subr.bf16.mxu1 %v2042_v22 }
 0x39a   :  { %1890 = vmatpush3.bf16.msra.mxu0 %v2145_v19  ;;  %1914 = vmatpush3.bf16.msra.mxu1 %v2145_v19 }
 0x39b   :  { %1891 = vmatprep.subr.bf16.mxu0 %v2042_v22  ;;  %1915 = vmatprep.subr.bf16.mxu1 %v2042_v22 }
 0x39c   :  { %1668 = vmatprep.mubr.msk.f32.mxu0 %vm2039_vm2, %v2038_v1  ;;  %1703 = vmatprep.mubr.msk.f32.mxu1 %vm2039_vm2, %v2038_v1 }
 0x39e   :  { %1893 = vmatpush3.bf16.msra.mxu0 %v2161_v23  ;;  %1917 = vmatpush3.bf16.msra.mxu1 %v2161_v23 }
 0x39f   :  { %1894 = vmatprep.subr.bf16.mxu0 %v2042_v22  ;;  %1918 = vmatprep.subr.bf16.mxu1 %v2042_v22 }
 0x3a1   :  { %v917_v42 = vpop.permute.xlu1 %916 }
 0x3a2   :  { %1896 = vmatpush3.bf16.msra.mxu0 %v2177_v26  ;;  %1920 = vmatpush3.bf16.msra.mxu1 %v2177_v26 }
 0x3a3   :  { %1897 = vmatprep.subr.bf16.mxu0 %v2042_v22  ;;  %1921 = vmatprep.subr.bf16.mxu1 %v2042_v22 }
 0x3a6   :  { %1899 = vmatpush3.bf16.msra.mxu0 %v2189_v29  ;;  %1923 = vmatpush3.bf16.msra.mxu1 %v2189_v29 }
 0x3a7   :  { %1900 = vmatprep.subr.bf16.mxu0 %v2042_v22  ;;  %1924 = vmatprep.subr.bf16.mxu1 %v2042_v22 }
 0x3aa   :  { %1902 = vmatpush3.bf16.msra.mxu0 %v2201_v32  ;;  %1926 = vmatpush3.bf16.msra.mxu1 %v2201_v32 }
 0x3ab   :  { %1903 = vmatprep.subr.bf16.mxu0 %v2042_v22  ;;  %1927 = vmatprep.subr.bf16.mxu1 %v2042_v22 }
 0x3ae   :  { %1905 = vmatpush3.bf16.msra.mxu0 %v2213_v35  ;;  %1929 = vmatpush3.bf16.msra.mxu1 %v2213_v35 }
 0x3af   :  { %1906 = vmatprep.subr.bf16.mxu0 %v2042_v22  ;;  %1930 = vmatprep.subr.bf16.mxu1 %v2042_v22 }
 0x3b2   :  { %1908 = vmatpush3.bf16.msra.mxu0 %v2227_v38  ;;  %1932 = vmatpush3.bf16.msra.mxu1 %v2227_v38 }
 0x3b3   :  { %1909 = vmatprep.subr.bf16.mxu0 %v2042_v22  ;;  %1933 = vmatprep.subr.bf16.mxu1 %v2042_v22 }
 0x3b6   :  { %1911 = vmatpush3.bf16.msra.mxu0 %v2239_v41  ;;  %1935 = vmatpush3.bf16.msra.mxu1 %v2239_v41 }
 0x3b7   :  { %1936 = vmatprep.subr.bf16.mxu0 %v2042_v22  ;;  %1968 = vmatprep.subr.bf16.mxu1 %v2042_v22 }
 0x3f3   :  { %v757_v6 = vpop.f32.mrb[6].mxu1 }
 0x3f4   :  { %v1625_v7 = vpop.f32.mrb[7].mxu1 }
 0x46b   :  { %v833_v33 = vpop.f32.mrb[8].mxu0  ;;  %v909_v34 = vpop.f32.mrb[8].mxu1 }
 0x46c   :  { %v834_v36 = vadd.f32 %v833_v33, %v757_v6  ;;  %v1630_v37 = vpop.f32.mrb[9].mxu0  ;;  %v1635_v39 = vpop.f32.mrb[9].mxu1 }
 0x46e   :  { %v913_v40 = vadd.f32 %v909_v34, %v834_v36 }
 0x470   :  { %v919_v43 = vadd.f32 %v917_v42, %v913_v40 }
 0x472   :  { %v990_v44 = vmul.f32 %v919_v43, %v919_v43  ;;  %1669 = vmatmul.mubr.f32.vlgmr.msra.gmra.mrb[10].mxu0 %v919_v43 }
 0x473   :  { %1939 = vmatpush3.bf16.xpose.msk.msra.mxu0 %vm2247_vm4, %v2145_v19  ;;  %1738 = vmatprep.mubr.msk.f32.mxu0 %vm2039_vm2, %v2038_v1 }
 0x474   :  { %1704 = vmatmul.mubr.f32.vlgmr.msra.gmra.mrb[10].mxu1 %v990_v44  ;;  %1940 = vmatprep.subr.bf16.mxu0 %v2042_v22 }
 0x475   :  { %1971 = vmatpush3.bf16.xpose.msk.msra.mxu1 %vm2247_vm4, %v2145_v19  ;;  %1773 = vmatprep.mubr.msk.f32.mxu1 %vm2039_vm2, %v2038_v1 }
 0x476   :  { %1972 = vmatprep.subr.bf16.mxu1 %v2042_v22 }
 0x47b   :  { %1943 = vmatpush3.bf16.xpose.msk.msra.mxu0 %vm2247_vm4, %v2161_v23 }
 0x47c   :  { %1944 = vmatprep.subr.bf16.mxu0 %v2042_v22 }
 0x47d   :  { %1975 = vmatpush3.bf16.xpose.msk.msra.mxu1 %vm2247_vm4, %v2161_v23 }
 0x47e   :  { %1976 = vmatprep.subr.bf16.mxu1 %v2042_v22 }
 0x483   :  { %1947 = vmatpush3.bf16.xpose.msk.msra.mxu0 %vm2247_vm4, %v2177_v26 }
 0x484   :  { %1948 = vmatprep.subr.bf16.mxu0 %v2042_v22 }
 0x485   :  { %1979 = vmatpush3.bf16.xpose.msk.msra.mxu1 %vm2247_vm4, %v2177_v26 }
 0x486   :  { %1980 = vmatprep.subr.bf16.mxu1 %v2042_v22 }
 0x48b   :  { %1951 = vmatpush3.bf16.xpose.msk.msra.mxu0 %vm2247_vm4, %v2189_v29 }
 0x48c   :  { %1952 = vmatprep.subr.bf16.mxu0 %v2042_v22 }
 0x48d   :  { %1983 = vmatpush3.bf16.xpose.msk.msra.mxu1 %vm2247_vm4, %v2189_v29 }
 0x48e   :  { %1984 = vmatprep.subr.bf16.mxu1 %v2042_v22 }
 0x493   :  { %1955 = vmatpush3.bf16.xpose.msk.msra.mxu0 %vm2247_vm4, %v2201_v32 }
 0x494   :  { %1956 = vmatprep.subr.bf16.mxu0 %v2042_v22 }
 0x495   :  { %1987 = vmatpush3.bf16.xpose.msk.msra.mxu1 %vm2247_vm4, %v2201_v32 }
 0x496   :  { %1988 = vmatprep.subr.bf16.mxu1 %v2042_v22 }
 0x49b   :  { %1959 = vmatpush3.bf16.xpose.msk.msra.mxu0 %vm2247_vm4, %v2213_v35 }
 0x49c   :  { %1960 = vmatprep.subr.bf16.mxu0 %v2042_v22 }
 0x49d   :  { %1991 = vmatpush3.bf16.xpose.msk.msra.mxu1 %vm2247_vm4, %v2213_v35 }
 0x49e   :  { %1992 = vmatprep.subr.bf16.mxu1 %v2042_v22 }
 0x4a3   :  { %1963 = vmatpush3.bf16.xpose.msk.msra.mxu0 %vm2247_vm4, %v2227_v38 }
 0x4a4   :  { %1964 = vmatprep.subr.bf16.mxu0 %v2042_v22 }
 0x4a5   :  { %1995 = vmatpush3.bf16.xpose.msk.msra.mxu1 %vm2247_vm4, %v2227_v38 }
 0x4a6   :  { %1996 = vmatprep.subr.bf16.mxu1 %v2042_v22 }
 0x4ab   :  { %1967 = vmatpush3.bf16.xpose.msk.msra.mxu0 %vm2247_vm4, %v2239_v41 }
 0x4ad   :  { %1999 = vmatpush3.bf16.xpose.msk.msra.mxu1 %vm2247_vm4, %v2239_v41 }
 0x545   :  { %v986_v1 = vpop.f32.mrb[10].mxu0 }
 0x546   :  { %v1061_v19 = vmul.f32 0.0625, %v986_v1  ;;  %v1670_v23 = vpop.f32.mrb[11].mxu0 }
 0x547   :  { %v1057_v26 = vpop.f32.mrb[10].mxu1 }
 0x548   :  { %v1063_v29 = vmul.f32 %v1061_v19, %v1061_v19  ;;  %v1062_v32 = vmul.f32 0.0625, %v1057_v26  ;;  %v1705_v35 = vpop.f32.mrb[11].mxu1 }
 0x54a   :  { %v1064_v45 = vsub.f32 %v1062_v32, %v1063_v29 }
 0x54c   :  { %v1065_v46 = vmax.f32 %v1064_v45, 0.0 }
 0x54e   :  { %v1066_v38 = vadd.f32 1e-05, %v1065_v46 }
 0x550   :  { %2011 = vrsqrt.f32 %v1066_v38 }
 0x55a   :  { %v2012_v22 = vpop.eup %2011 }
 0x55b   :  { %1739 = vmatmul.mubr.msk.f32.vlgmr.msra.gmra.mrb[12].mxu0 %vm468_vm3, %v2012_v22  ;;  %v1141_v47 = vmul.f32 %v2012_v22, %v1061_v19 }
 0x55d   :  { %1774 = vmatmul.mubr.msk.f32.vlgmr.msra.gmra.mrb[12].mxu1 %vm468_vm3, %v1141_v47 }
 0x62e   :  { %v1137_v48 = vpop.f32.mrb[12].mxu0 }
 0x62f   :  { %v1215_v49 = vmul.f32 %v1137_v48, %v919_v43  ;;  %v1740_v41 = vpop.f32.mrb[13].mxu0 }
 0x630   :  { %v1211_v50 = vpop.f32.mrb[12].mxu1 }
 0x631   :  { %v1216_v51 = vsub.f32 %v1215_v49, %v1211_v50  ;;  %v1775_v52 = vpop.f32.mrb[13].mxu1 }
 0x633   :  { %v1217_v53 = vadd.f32 %v1216_v51, %v2097_v0 }
 0x635   :  { %vm1218_vm6 = vcmp.ge.f32.partialorder %v1217_v53, 0.0  ;;  %v1219_v54 = vmul.f32 %v1217_v53, %v667_v10 }
 0x637   :  { %v1220_v55 = vsel %vm1218_vm6, %v1217_v53, %v1219_v54 }
 0x638   :  { %1221 = vst [vmem:[#allocation3] sm:$0xf] %v1220_v55 }
 0x639   :  { %2024 = shalt.err (!%p2021_p4)
}
 0x63a   :  { %s2025_s21 = scalar_lea.hbm %s2489_s9, 64 }
 0x63b   :  { %p2026_p5 = scmp.ne.s32.totalorder %s2489_s9, %s2025_s21  ;;  %p2029_p6 = scmp.lt.u32.totalorder %s2025_s21, %s2489_s9 }
 0x63d   :  { %p2031_p7 = pnand %p2029_p6, %p2026_p5 }
 0x63f   :  { %2034 = shalt.err (!%p2031_p7)
}
 0x640   :  { %1231 = dma.vmem_to_hbm [thread:$0]  %s1229_s16, 64, %s2489_s9, [#allocation4]  }
 0x641   :  { %2035 = dma.done.wait [#allocation4], 64  }
 0x642   :  { %2036 = vsyncadd [#allocation4], 4294967232 }
 0x643   :  { %1235 = vsyncpa [#allocation4], 1 }

</bundles_post_ra>
